<compile_context>
chip_gen: v5e
topology: v5e:2x2
jax: 0.10.0
libtpu: 0.0.40
codegen_flags: <defaults>
</compile_context>

<pallas_src>
import jax
import jax.numpy as jnp
from jax.experimental import pallas as pl
from jax.experimental.pallas import tpu as pltpu


def _attn_pool_kernel(x_ref, w_ref, o_ref):
    # x_ref: (TB, S, H) VMEM block of the input
    # w_ref: (H, 1)     VMEM attention_fc weight column
    # o_ref: (TB, H)    VMEM output block
    TB, S, H = x_ref.shape

    # attention_fc scores: a single (TB*S, H) @ (H, 1) MXU matmul with f32
    # accumulation (leading-dim merge is a layout-free reshape).
    scores = jnp.dot(x_ref[...].reshape(TB * S, H), w_ref[...],
                     preferred_element_type=jnp.float32)        # (TB*S, 1)
    scores = scores.reshape(TB, S, 1)

    # Numerically-stable softmax over S (sublane axis of the score column).
    # Exact normalization: the divide is on a tiny (TB, S, 1) tensor.
    m = jnp.max(scores, axis=1, keepdims=True)                  # (TB, 1, 1)
    e = jnp.exp(scores - m)                                     # (TB, S, 1)
    p = e / jnp.sum(e, axis=1, keepdims=True)                   # (TB, S, 1)

    # Weighted sum over S on the VPU. x is read from the VMEM ref again here
    # (second read) so the (TB, S, H) tile is not held live across the
    # softmax above; mul/accumulate happens in f32 (bf16 x promotes).
    acc = jnp.sum(x_ref[...] * p, axis=1)                       # (TB, H) f32
    o_ref[...] = acc.astype(o_ref.dtype)


def _round_up(x, m):
    return ((x + m - 1) // m) * m


def _vmem_capacity_bytes():
    try:
        cap = int(pltpu.get_tpu_info().vmem_capacity_bytes)
        if cap > 0:
            return cap
    except Exception:
        pass
    return 64 * 1024 * 1024  # conservative fallback: v7x per-TensorCore VMEM


def _pick_tb(B, S, H, itemsize, vmem_cap):
    """Batch tile size: largest TB that (a) fits a conservative VMEM plan,
    (b) reaches the ~8 MiB/step HBM-roofline saturation point, and (c) keeps
    >= 2 grid steps so v7x's two TensorCores both get work."""
    sublane = 16 if itemsize == 2 else 8          # sublane packing of o_ref
    row_bytes = S * H * itemsize
    # VMEM plan per step: 2x double-buffered input block + roughly one f32
    # copy of the block for in-kernel temporaries (product before the
    # S-reduction, scores/exp)  =>  (2 + 4/itemsize) bytes per block byte.
    factor = 2.0 + 4.0 / itemsize
    tb_vmem = int((0.5 * vmem_cap) / (factor * row_bytes))
    # ~8 MiB blocks saturate the measured HBM roofline; bigger only burns VMEM.
    tb_target = max(1, (8 * 1024 * 1024) // row_bytes)
    tb = (min(tb_vmem, tb_target) // sublane) * sublane
    tb = max(tb, sublane)
    # TODO(synk): if even TB == sublane overflows the VMEM plan (very large
    # S*H), add an S grid axis ("arbitrary") with online-softmax scratch.
    if B > sublane:
        # Keep >= 2 grid steps so the "parallel" batch axis shards across both
        # TensorCores on v7x.
        tb = min(tb, _round_up((B + 1) // 2, sublane))
    tb = min(tb, _round_up(B, sublane))
    return tb


def softmax_attention_pool(x, weight, bias=None):
    """x: (B, S, H); weight: attention_fc weight, shape (H,) or (1, H).

    `bias` is accepted for API parity with nn.Linear(hidden_dim, 1) but is a
    mathematical no-op under the softmax (shift invariance), so it is unused.
    Feed x as bf16 upstream on bandwidth-limited parts (v5e) — accumulation
    stays f32 in-kernel.
    """
    del bias
    B, S, H = x.shape
    itemsize = jnp.dtype(x.dtype).itemsize

    vmem_cap = _vmem_capacity_bytes()
    TB = _pick_tb(B, S, H, itemsize, vmem_cap)
    n_steps = pl.cdiv(B, TB)
    block_bytes = TB * S * H * itemsize

    w_col = jnp.asarray(weight).reshape(H, 1).astype(x.dtype)

    # Input spec for x. Only go to a 3-deep pipeline when there are many small
    # steps (DMA issue latency dominates); default double-buffering otherwise.
    x_index = lambda i: (i, 0, 0)
    x_spec = pl.BlockSpec((TB, S, H), x_index)
    if n_steps >= 4 and block_bytes < (1 << 20) and hasattr(pl, "Buffered"):
        try:
            x_spec = pl.BlockSpec((TB, S, H), x_index,
                                  pipeline_mode=pl.Buffered(3))
        except TypeError:
            pass  # BlockSpec without pipeline_mode: keep default buffering

    # VMEM demand estimate (+30% margin for compiler scratch / in-kernel
    # copies). Only raise the scoped limit when the default would not suffice;
    # clamp ~25% below physical VMEM (~48 MiB on v7x, ~96 MiB on v5e/v6e).
    needed = 2 * block_bytes + TB * S * H * 4 + 2 * TB * H * 4 + 2 * H * 4
    needed = int(needed * 1.3) + (1 << 20)
    cp_kwargs = dict(dimension_semantics=("parallel",))
    if needed > 15 * 1024 * 1024:
        cp_kwargs["vmem_limit_bytes"] = min(needed, int(0.75 * vmem_cap))

    return pl.pallas_call(
        _attn_pool_kernel,
        out_shape=jax.ShapeDtypeStruct((B, H), x.dtype),
        grid_spec=pltpu.PrefetchScalarGridSpec(
            num_scalar_prefetch=0,
            grid=(n_steps,),
            in_specs=[
                x_spec,
                pl.BlockSpec((H, 1), lambda i: (0, 0)),
            ],
            out_specs=pl.BlockSpec((TB, H), lambda i: (i, 0)),
        ),
        compiler_params=pltpu.CompilerParams(**cp_kwargs),
    )(x, w_col)


def _reference(x, weight, bias):
    # Pure-JAX mirror of the PyTorch forward (B > 1, S > 1 path).
    scores = jnp.einsum("bsh,h->bs", x, weight) + bias        # (B, S)
    p = jax.nn.softmax(scores, axis=-1)                       # softmax over S
    return jnp.sum(x * p[..., None], axis=-2)                 # (B, H)


if __name__ == "__main__":
    B, S, H = 16, 8, 32   # 2 grid steps of TB=8 batch rows each

    key = jax.random.PRNGKey(0)
    kx, kw, kb = jax.random.split(key, 3)

    x = jax.random.normal(kx, (B, S, H), dtype=jnp.float32)

    # Deterministic parameter init for nn.Linear(hidden_dim, 1):
    # weight shape (1, H) -> flattened (H,), bias shape (1,) -> scalar.
    bound = 1.0 / (H ** 0.5)
    weight = jax.random.uniform(kw, (H,), minval=-bound, maxval=bound,
                                dtype=jnp.float32)
    bias = jax.random.uniform(kb, (), minval=-bound, maxval=bound,
                              dtype=jnp.float32)

    out = softmax_attention_pool(x, weight, bias)
    out = jax.block_until_ready(out)

    ref = _reference(x, weight, bias)
    assert out.shape == (B, H)
    # Scores go through a default-precision MXU matmul (bf16 passes), so keep
    # a correspondingly loose tolerance vs the pure-JAX reference.
    assert jnp.allclose(out, ref, atol=2e-3, rtol=2e-3), "mismatch vs reference"

    print("KERNEL_OK")
</pallas_src>

<mosaic_0001>
module attributes {stable_mosaic.version = 11 : i64} {
  func.func @_attn_pool_kernel(%arg0: i32, %arg1: memref<8x8x32xf32, #tpu.memory_space<vmem>>, %arg2: memref<32x1xf32, #tpu.memory_space<vmem>>, %arg3: memref<8x32xf32, #tpu.memory_space<vmem>>) attributes {dimension_semantics = [#tpu.dimension_semantics<parallel>], iteration_bounds = array<i64: 2>, scalar_prefetch = 0 : i64, scratch_operands = 0 : i64, tpu.core_type = #tpu.core_type<tc>, window_params = [{transform_indices = @transform_0, window_bounds = array<i64: 8, 8, 32>}, {pipeline_mode = #tpu.pipeline_mode<synchronous>, transform_indices = @transform_1, window_bounds = array<i64: 32, 1>}, {transform_indices = @transform_2, window_bounds = array<i64: 8, 32>}]} {
    %c0 = arith.constant 0 : index
    %c0_0 = arith.constant 0 : index
    %c0_1 = arith.constant 0 : index
    %0 = vector.load %arg1[%c0, %c0_0, %c0_1] : memref<8x8x32xf32, #tpu.memory_space<vmem>>, vector<8x8x32xf32>
    %1 = vector.shape_cast %0 : vector<8x8x32xf32> to vector<64x32xf32>
    %c0_2 = arith.constant 0 : index
    %c0_3 = arith.constant 0 : index
    %2 = vector.load %arg2[%c0_2, %c0_3] : memref<32x1xf32, #tpu.memory_space<vmem>>, vector<32x1xf32>
    %cst = arith.constant dense<0.000000e+00> : vector<64x1xf32>
    %3 = tpu.matmul %1, %2, %cst {dimension_numbers = #tpu.dot_dimension_numbers<[1], [0], [0], [1], [0, 0, 1, 1], [], []>} : vector<64x32xf32>, vector<32x1xf32>, vector<64x1xf32> -> vector<64x1xf32>
    %4 = vector.shape_cast %3 : vector<64x1xf32> to vector<8x8x1xf32>
    %cst_4 = arith.constant dense<0xFF800000> : vector<8x1xf32>
    %5 = vector.multi_reduction <maximumf>, %4, %cst_4 [1] : vector<8x8x1xf32> to vector<8x1xf32>
    %6 = vector.shape_cast %5 : vector<8x1xf32> to vector<8x1x1xf32>
    %7 = vector.broadcast %6 : vector<8x1x1xf32> to vector<8x8x1xf32>
    %8 = arith.subf %4, %7 : vector<8x8x1xf32>
    %9 = math.exp %8 : vector<8x8x1xf32>
    %cst_5 = arith.constant dense<0.000000e+00> : vector<8x1xf32>
    %10 = vector.multi_reduction <add>, %9, %cst_5 [1] : vector<8x8x1xf32> to vector<8x1xf32>
    %11 = vector.shape_cast %10 : vector<8x1xf32> to vector<8x1x1xf32>
    %12 = vector.broadcast %11 : vector<8x1x1xf32> to vector<8x8x1xf32>
    %13 = arith.divf %9, %12 : vector<8x8x1xf32>
    %c0_6 = arith.constant 0 : index
    %c0_7 = arith.constant 0 : index
    %c0_8 = arith.constant 0 : index
    %14 = vector.load %arg1[%c0_6, %c0_7, %c0_8] : memref<8x8x32xf32, #tpu.memory_space<vmem>>, vector<8x8x32xf32>
    %15 = vector.broadcast %13 : vector<8x8x1xf32> to vector<8x8x32xf32>
    %16 = arith.mulf %14, %15 : vector<8x8x32xf32>
    %cst_9 = arith.constant dense<0.000000e+00> : vector<8x32xf32>
    %17 = vector.multi_reduction <add>, %16, %cst_9 [1] : vector<8x8x32xf32> to vector<8x32xf32>
    %c0_10 = arith.constant 0 : index
    %c0_11 = arith.constant 0 : index
    %18 = vector.load %arg3[%c0_10, %c0_11] : memref<8x32xf32, #tpu.memory_space<vmem>>, vector<8x32xf32>
    tpu.vector_store %arg3[%c0_10, %c0_11], %17 {strides = array<i32>} : memref<8x32xf32, #tpu.memory_space<vmem>>, vector<8x32xf32>,
    return
  }
  func.func @transform_0(%arg0: i32) -> (i32, i32, i32) {
    %c0_i32 = arith.constant 0 : i32
    %c0_i32_0 = arith.constant 0 : i32
    %c0_i32_1 = arith.constant 0 : i32
    return %arg0, %c0_i32, %c0_i32_0 : i32, i32, i32
  }
  func.func @transform_1(%arg0: i32) -> (i32, i32) {
    %c0_i32 = arith.constant 0 : i32
    %c0_i32_0 = arith.constant 0 : i32
    %c0_i32_1 = arith.constant 0 : i32
    return %c0_i32, %c0_i32_0 : i32, i32
  }
  func.func @transform_2(%arg0: i32) -> (i32, i32) {
    %c0_i32 = arith.constant 0 : i32
    %c0_i32_0 = arith.constant 0 : i32
    return %arg0, %c0_i32 : i32, i32
  }
}

</mosaic_0001>

<bundles_post_ra>
// kernel: tpu_custom_call.1
= control target key start
LH: loop header
LB: loop body
LE: loop exit
PB: predicated region body
PF: predicated region fallthrough
CT: control target
= control target key end

     0   :  { %7 = vsyncpa [#allocation3], 0  ;;  %s1295_s0 = inlined_call_operand.hbm [shape: f32[16,8,32], index: 0, kind: input, shape index: {}]   ;;  %s1296_s1 = inlined_call_operand.vmem [shape: f32[32,1], index: 1, kind: input, shape index: {}]   ;;  %s1297_s2 = inlined_call_operand.hbm [shape: f32[16,32], index: 2, kind: output, shape index: {}]  }
   0x1   :  { %9 = vsyncpa [#allocation3 + $0x1], 0 }
   0x2   :  { %10 = vsyncpa [#allocation4], 0 }
   0x3   :  { %12 = vsyncpa [#allocation4 + $0x1], 0  ;;  %s948_s9 = smov 0   ;;  %s950_s10 = smov 0  }
   0x4   :  { %s952_s11 = smov 0   ;;  %s954_s12 = smov 0  }
   0x5 LB: > { %s969_s13 = sadd.s32 4294967295, %s928_s12   ;;  %s714_s14 = sadd.s32 4294967294, %s928_s12   ;;  %s928_s12 = sphi %s954_s12, %s1313_s12   ;;  %s924_s11 = sphi %s952_s11, %s1312_s11   ;;  %s920_s10 = sphi %s950_s10, %s1311_s10   ;;  %s916_s9 = sphi %s948_s9, %s1310_s9  }
   0x6   : > { %s973_s15 = sadd.s32 1, %s928_s12   ;;  %s25_s16 = sadd.s32 1, %s924_s11 }
   0x7   : > { %s22_s17 = ssub.s32 %s928_s12, %s973_s15  ;;  %p32_p0 = scmp.ne.s32.totalorder %s924_s11, %s920_s10 }
   0x8   : > { %p23_p1 = scmp.eq.s32.totalorder %s22_s17, 0  ;;  %p33_p2 = scmp.eq.s32.totalorder %s928_s12, 0 }
   0x9   : > { %p38_p3 = scmp.ne.s32.totalorder %s920_s10, %s916_s9  ;;  %p39_p4 = scmp.eq.s32.totalorder %s969_s13, 0 }
   0xa   : > { %s985_s18 = scalar_select %p23_p1, %s924_s11, %s25_s16  }
   0xb   : > { %p987_p5 = por %p33_p2, %p32_p0  ;;  %p991_p6 = por %p39_p4, %p38_p3 }
   0xc   : > { %p83_p7 = scmp.eq.s32.totalorder %s969_s13, 1  ;;  %p89_p8 = scmp.eq.s32.totalorder %s714_s14, 1 }
   0xd   : > { %p760_p10 = scmp.lt.s32.totalorder %s928_s12, 2  ;;  %s112_s23 = sand.u32 1, %s924_s11  }
   0xe   : > { %p998_p11 = por %p83_p7, %p32_p0  ;;  %p1002_p12 = por %p89_p8, %p38_p3 }
   0xf   : > { %s735_s24 = sshll.u32 %s928_s12, 6  ;;  %s717_s25 = sshll.u32 %s112_s23, 6 }
  0x10   : > { %s121_s28 = scalar_lea.hbm %s1295_s0, %s735_s24  ;;  %s116_s30 = scalar_lea.vmem [#allocation2], %s717_s25 }
  0x11   : > { %s122_s29 = sshll.u32 %s121_s28, 4  ;;  %s124_s3 = sshll.u32 %s116_s30, 4  ;;  %s123_s29 = int_to_ptr.hbm [resolvable:$true] %s122_s29  ;;  %s125_s3 = int_to_ptr.vmem [resolvable:$true] %s124_s3 }
  0x12   : > { %p1013_p13 = pnand %p760_p10, %p987_p5  ;;  %p720_p0 = scmp.ge.s32.totalorder %s928_s12, 1 }
  0x13   : > { %p132_p1 = scmp.lt.s32.totalorder %s928_s12, 3  ;;  %s113_s5 = scalar_lea.sflag [#allocation3], %s112_s23 }
  0x14   : > { %s832_s6 = sshra.s32 %s123_s29, 4  ;;  %p836_p3 = pneg %p1013_p13  ;;  %s833_s6 = int_to_ptr.hbm [resolvable:$true] %s832_s6 }
  0x15   : > { %s834_s7 = scalar_lea.hbm %s833_s6, 64  ;;  %s839_s16 = scalar_lea.hbm %s1295_s0, 128 }
  0x16   : > { %p835_p2 = scmp.ne.s32.totalorder %s833_s6, %s834_s7  ;;  %p840_p5 = scmp.lt.s32.totalorder %s833_s6, %s1295_s0 }
  0x17   : > { %p841_p8 = scmp.lt.s32.totalorder %s839_s16, %s834_s7 }
  0x18   : > { %p837_p4 = pnand %p836_p3, %p835_p2 }
  0x19   : > { %p842_p10 = por %p841_p8, %p840_p5 }
  0x1a   : > { %p838_p7 = pneg %p837_p4 }
  0x1c   : > { %p843_p9 = pnand %p842_p10, %p838_p7 }
  0x1e   : > { %846 = shalt.err (!%p843_p9)
}
  0x1f   : > { %s930_s23 = smov 128   ;;  %s931_s24 = smov 8  }
  0x20   : > { %755 = dma.hbm_to_vmem [thread:$0]  (!%p1013_p13), %s123_s29, 1024, %s125_s3, %s113_s5, %s930_s23, %s930_s23, %s931_s24  }
  0x21   : > { %p133_p2 = pnand %p720_p0, %p132_p1 }
  0x22   : > { %s1034_s25 = sand.u32 (!%p133_p2), 1, %s920_s10  }
  0x23   : > { %136 = sbr.rel (%p133_p2) target bundleno = 388 (0x184), region = 28  ;;  %s721_s26 = sshll.u32 (!%p133_p2), %s1034_s25, 6 }
  0x24   : > { %s139_s27 = scalar_lea.sflag (!%p133_p2), [#allocation3], %s1034_s25  ;;  %s1038_s28 = scalar_lea.vmem (!%p133_p2), [#allocation2], %s721_s26 }
  0x28   : > { %907 = dma.done.wait (%p991_p6), %s139_s27, 1024  }
  0x29   : > { %909 = vsyncadd (%p991_p6), %s139_s27, 4294966272  ;;  %v176_v0 = vld [vmem:[%s1296_s1 + $0x18] sm:$0xff]  ;;  %v175_v1 = vld [vmem:[%s1296_s1 + $0x10] sm:$0xff]  ;;  %vm177_vm0 = vcmask 261120   ;;  %vm243_vm1 = vcmask 7168   ;;  %s722_s8 = sshll.u32 %s1034_s25, 3 }
  0x2a   : > { %214 = vmatpush.msra.mxu0 %v176_v0  ;;  %736 = vmatpush.msra.mxu1 %v176_v0  ;;  %v174_v2 = vld [vmem:[%s1296_s1 + $0x8] sm:$0xff]  ;;  %v173_v3 = vld [vmem:[%s1296_s1] sm:$0xff]  ;;  %v1060_v5 = vld [vmem:[%s1038_s28 + $0x10] sm:$0xff]  ;;  %s732_s14 = sshll.u32 %s969_s13, 3  ;;  %s163_s23 = scalar_lea.vmem [#allocation5], %s722_s8 }
  0x2b   : > { %737 = vmatpush.msra.mxu2 %v176_v0  ;;  %738 = vmatpush.msra.mxu3 %v176_v0  ;;  %v1057_v4 = vld [vmem:[%s1038_s28] sm:$0xff]  ;;  %v1066_v7 = vld [vmem:[%s1038_s28 + $0x30] sm:$0xff]  ;;  %v1077_v8 = vld [vmem:[%s1038_s28 + $0x8] sm:$0xff]  ;;  %s639_s19 = scalar_lea.hbm %s1297_s2, %s732_s14  ;;  %s641_s13 = sshll.u32 %s163_s23, 4  ;;  %s642_s13 = int_to_ptr.vmem [resolvable:$true] %s641_s13 }
  0x2c   : > { %215 = vmatpush.msra.mxu0 %v175_v1  ;;  %739 = vmatpush.msra.mxu1 %v175_v1  ;;  %v1063_v6 = vld [vmem:[%s1038_s28 + $0x20] sm:$0xff]  ;;  %v1080_v9 = vld [vmem:[%s1038_s28 + $0x18] sm:$0xff]  ;;  %v1083_v10 = vld [vmem:[%s1038_s28 + $0x28] sm:$0xff]  ;;  %s643_s24 = sshll.u32 %s639_s19, 4  ;;  %s629_s26 = scalar_lea.sflag [#allocation4], %s1034_s25  ;;  %s644_s24 = int_to_ptr.hbm [resolvable:$true] %s643_s24 }
  0x2d   : > { %740 = vmatpush.msra.mxu2 %v175_v1  ;;  %741 = vmatpush.msra.mxu3 %v175_v1  ;;  %v1086_v11 = vld [vmem:[%s1038_s28 + $0x38] sm:$0xff]  ;;  %s876_s27 = sshra.s32 %s644_s24, 4  ;;  %s882_s3 = scalar_lea.hbm %s1297_s2, 16  ;;  %s877_s27 = int_to_ptr.hbm [resolvable:$true] %s876_s27 }
  0x2e   : > { %216 = vmatpush.msra.mxu0 %v174_v2  ;;  %742 = vmatpush.msra.mxu1 %v174_v2  ;;  %s878_s28 = scalar_lea.hbm %s877_s27, 8  ;;  %p883_p0 = scmp.lt.s32.totalorder %s877_s27, %s1297_s2 }
  0x2f   : > { %743 = vmatpush.msra.mxu2 %v174_v2  ;;  %744 = vmatpush.msra.mxu3 %v174_v2  ;;  %p879_p6 = scmp.ne.s32.totalorder %s877_s27, %s878_s28  ;;  %p884_p1 = scmp.lt.s32.totalorder %s882_s3, %s878_s28 }
  0x30   : > { %217 = vmatpush.msra.mxu0 %v173_v3  ;;  %745 = vmatpush.msra.mxu1 %v173_v3 }
  0x31   : > { %746 = vmatpush.msra.mxu2 %v173_v3  ;;  %747 = vmatpush.msra.mxu3 %v173_v3  ;;  %p880_p9 = pnand %p879_p6, %p998_p11  ;;  %p885_p3 = por %p884_p1, %p883_p0 }
  0x32   : > { %723 = vmatmul.msk.f32.vlgmr.msra.gmra.mxu0 %vm177_vm0, %v1057_v4  ;;  %725 = vmatmul.msk.f32.vlgmr.msra.gmra.mxu1 %vm177_vm0, %v1060_v5 }
  0x33   : > { %727 = vmatmul.msk.f32.vlgmr.msra.gmra.mxu2 %vm177_vm0, %v1063_v6  ;;  %729 = vmatmul.msk.f32.vlgmr.msra.gmra.mxu3 %vm177_vm0, %v1066_v7  ;;  %p881_p13 = pneg %p880_p9 }
  0x35   : > { %p886_p4 = pnand %p885_p3, %p881_p13 }
  0x3a   : > { %724 = vmatmul.msk.f32.gmra.mxu0 %vm177_vm0, %v1077_v8  ;;  %726 = vmatmul.msk.f32.gmra.mxu1 %vm177_vm0, %v1080_v9 }
  0x3b   : > { %728 = vmatmul.msk.f32.gmra.mxu2 %vm177_vm0, %v1083_v10  ;;  %730 = vmatmul.msk.f32.gmra.mxu3 %vm177_vm0, %v1086_v11 }
  0xaf   : > { %v219_v12 = vpop.f32.mrf.mxu0  ;;  %v225_v13 = vpop.f32.mrf.mxu1 }
  0xb0   : > { %v244_v14 = vsel %vm243_vm1, %v219_v12, -inf  ;;  %v258_v15 = vsel %vm243_vm1, %v225_v13, -inf }
  0xb1   : > { %v245_v16 = vrot.slane %v244_v14, 4  ;;  %v259_v17 = vrot.slane %v258_v15, 4 }
  0xb3   : > { %v246_v18 = vmax.f32 %v244_v14, %v245_v16  ;;  %v260_v19 = vmax.f32 %v258_v15, %v259_v17 }
  0xb5   : > { %v247_v20 = vrot.slane %v246_v18, 2  ;;  %v261_v21 = vrot.slane %v260_v19, 2 }
  0xb6   : > { %v231_v22 = vpop.f32.mrf.mxu2  ;;  %v237_v23 = vpop.f32.mrf.mxu3 }
  0xb7   : > { %v248_v24 = vmax.f32 %v246_v18, %v247_v20  ;;  %v262_v25 = vmax.f32 %v260_v19, %v261_v21  ;;  %v272_v26 = vsel %vm243_vm1, %v231_v22, -inf  ;;  %v286_v27 = vsel %vm243_vm1, %v237_v23, -inf  ;;  %v222_v28 = vpop.f32.mrf.mxu0  ;;  %v228_v29 = vpop.f32.mrf.mxu1 }
  0xb8   : > { %v273_v30 = vrot.slane %v272_v26, 4  ;;  %v287_v31 = vrot.slane %v286_v27, 4  ;;  %v251_v32 = vsel %vm243_vm1, %v222_v28, -inf  ;;  %v265_v33 = vsel %vm243_vm1, %v228_v29, -inf }
  0xb9   : > { %v249_v34 = vrot.slane %v248_v24, 1  ;;  %v263_v35 = vrot.slane %v262_v25, 1  ;;  %v252_v36 = vrot.slane %v251_v32, 4  ;;  %v266_v37 = vrot.slane %v265_v33, 4 }
  0xba   : > { %v274_v38 = vmax.f32 %v272_v26, %v273_v30  ;;  %v288_v39 = vmax.f32 %v286_v27, %v287_v31 }
  0xbb   : > { %v250_v40 = vmax.f32 %v248_v24, %v249_v34  ;;  %v264_v41 = vmax.f32 %v262_v25, %v263_v35  ;;  %v253_v42 = vmax.f32 %v251_v32, %v252_v36  ;;  %v267_v43 = vmax.f32 %v265_v33, %v266_v37 }
  0xbc   : > { %v275_v44 = vrot.slane %v274_v38, 2  ;;  %v289_v45 = vrot.slane %v288_v39, 2 }
  0xbd   : > { %v300_v46 = vsub.f32 %v219_v12, %v250_v40  ;;  %v302_v47 = vsub.f32 %v225_v13, %v264_v41  ;;  %v254_v48 = vrot.slane %v253_v42, 2  ;;  %v268_v49 = vrot.slane %v267_v43, 2 }
  0xbe   : > { %v276_v50 = vmax.f32 %v274_v38, %v275_v44  ;;  %v290_v51 = vmax.f32 %v288_v39, %v289_v45  ;;  %v234_v52 = vpop.f32.mrf.mxu2  ;;  %v1102_v53 = vpop.f32.mrf.mxu3 }
  0xbf   : > { %v308_v54 = vmul.f32 1.442695, %v300_v46  ;;  %v312_v55 = vmul.f32 1.442695, %v302_v47  ;;  %v255_v56 = vmax.f32 %v253_v42, %v254_v48  ;;  %v269_v57 = vmax.f32 %v267_v43, %v268_v49 }
  0xc0   : > { %v277_v58 = vrot.slane %v276_v50, 1  ;;  %v291_v59 = vrot.slane %v290_v51, 1  ;;  %v279_v60 = vsel %vm243_vm1, %v234_v52, -inf  ;;  %v293_v61 = vsel %vm243_vm1, %v1102_v53, -inf }
  0xc1   : > { %800 = vpow2.f32 %v308_v54  ;;  %v256_v62 = vrot.slane %v255_v56, 1  ;;  %v270_v63 = vrot.slane %v269_v57, 1  ;;  %v280_v0 = vrot.slane %v279_v60, 4 }
  0xc2   : > { %802 = vpow2.f32 %v312_v55  ;;  %v278_v1 = vmax.f32 %v276_v50, %v277_v58  ;;  %v292_v2 = vmax.f32 %v290_v51, %v291_v59  ;;  %v294_v3 = vrot.slane %v293_v61, 4 }
  0xc3   : > { %v257_v12 = vmax.f32 %v255_v56, %v256_v62  ;;  %v271_v13 = vmax.f32 %v269_v57, %v270_v63  ;;  %v281_v14 = vmax.f32 %v279_v60, %v280_v0 }
  0xc4   : > { %v304_v15 = vsub.f32 %v231_v22, %v278_v1  ;;  %v306_v16 = vsub.f32 %v237_v23, %v292_v2  ;;  %v295_v17 = vmax.f32 %v293_v61, %v294_v3  ;;  %v932_v23 = vmov 0  }
  0xc5   : > { %v301_v18 = vsub.f32 %v222_v28, %v257_v12  ;;  %v303_v19 = vsub.f32 %v228_v29, %v271_v13  ;;  %v282_v20 = vrot.slane %v281_v14, 2  ;;  %798 = vset.pattern.permute.xlu1 %v932_v23  ;;  %797 = vset.pattern.permute.xlu0 %v932_v23 }
  0xc6   : > { %v316_v21 = vmul.f32 1.442695, %v304_v15  ;;  %v320_v24 = vmul.f32 1.442695, %v306_v16  ;;  %v296_v25 = vrot.slane %v295_v17, 2  ;;  %799 = vset.pattern.permute.xlu2 %v932_v23 }
  0xc7   : > { %v1107_v26 = vpop.eup %800  ;;  %v310_v27 = vmul.f32 1.442695, %v301_v18  ;;  %v314_v30 = vmul.f32 1.442695, %v303_v19  ;;  %v283_v31 = vmax.f32 %v281_v14, %v282_v20 }
  0xc8   : > { %v1109_v32 = vpop.eup %802  ;;  %v324_v33 = vsel %vm243_vm1, %v1107_v26, 0.0  ;;  %804 = vpow2.f32 %v316_v21  ;;  %v297_v22 = vmax.f32 %v295_v17, %v296_v25 }
  0xc9   : > { %v325_v28 = vrot.slane %v324_v33, 4  ;;  %v338_v29 = vsel %vm243_vm1, %v1109_v32, 0.0  ;;  %806 = vpow2.f32 %v320_v24  ;;  %v284_v34 = vrot.slane %v283_v31, 1 }
  0xca   : > { %v339_v35 = vrot.slane %v338_v29, 4  ;;  %808 = vpow2.f32 %v310_v27  ;;  %v298_v36 = vrot.slane %v297_v22, 1 }
  0xcb   : > { %v326_v37 = vadd.f32 %v325_v28, %v324_v33  ;;  %810 = vpow2.f32 %v314_v30  ;;  %v285_v38 = vmax.f32 %v283_v31, %v284_v34 }
  0xcc   : > { %v340_v39 = vadd.f32 %v339_v35, %v338_v29  ;;  %v299_v40 = vmax.f32 %v297_v22, %v298_v36 }
  0xcd   : > { %v327_v41 = vrot.slane %v326_v37, 2  ;;  %v305_v42 = vsub.f32 %v234_v52, %v285_v38 }
  0xce   : > { %v1115_v43 = vpop.eup %804  ;;  %v341_v44 = vrot.slane %v340_v39, 2  ;;  %v307_v45 = vsub.f32 %v1102_v53, %v299_v40 }
  0xcf   : > { %v1118_v46 = vpop.eup %806  ;;  %v328_v47 = vadd.f32 %v327_v41, %v326_v37  ;;  %v352_v48 = vsel %vm243_vm1, %v1115_v43, 0.0  ;;  %v318_v49 = vmul.f32 1.442695, %v305_v42 }
  0xd0   : > { %v1122_v50 = vpop.eup %808  ;;  %v342_v51 = vadd.f32 %v341_v44, %v340_v39  ;;  %v353_v54 = vrot.slane %v352_v48, 4  ;;  %v366_v55 = vsel %vm243_vm1, %v1118_v46, 0.0  ;;  %v322_v52 = vmul.f32 1.442695, %v307_v45 }
  0xd1   : > { %v1126_v56 = vpop.eup %810  ;;  %v329_v57 = vrot.slane %v328_v47, 1  ;;  %v367_v58 = vrot.slane %v366_v55, 4  ;;  %v331_v53 = vsel %vm243_vm1, %v1122_v50, 0.0  ;;  %812 = vpow2.f32 %v318_v49 }
  0xd2   : > { %v343_v59 = vrot.slane %v342_v51, 1  ;;  %v354_v60 = vadd.f32 %v353_v54, %v352_v48  ;;  %v332_v61 = vrot.slane %v331_v53, 4  ;;  %v345_v62 = vsel %vm243_vm1, %v1126_v56, 0.0 }
  0xd3   : > { %v1132_v63 = vadd.f32 %v329_v57, %v328_v47  ;;  %v368_v0 = vadd.f32 %v367_v58, %v366_v55  ;;  %v346_v1 = vrot.slane %v345_v62, 4  ;;  %814 = vpow2.f32 %v322_v52 }
  0xd4   : > { %v1134_v2 = vadd.f32 %v343_v59, %v342_v51  ;;  %v355_v3 = vrot.slane %v354_v60, 2  ;;  %v333_v12 = vadd.f32 %v332_v61, %v331_v53 }
  0xd5   : > { %816 = vrcp.f32 %v1132_v63  ;;  %v369_v13 = vrot.slane %v368_v0, 2  ;;  %v347_v14 = vadd.f32 %v346_v1, %v345_v62  ;;  %vm385_vm2 = vweird.f32 %v1132_v63 }
  0xd6   : > { %818 = vrcp.f32 %v1134_v2  ;;  %v356_v15 = vadd.f32 %v355_v3, %v354_v60  ;;  %v334_v16 = vrot.slane %v333_v12, 2  ;;  %v419_v23 = vand.u32 2147483647, %v1134_v2 }
  0xd7   : > { %v1138_v17 = vpop.eup %812  ;;  %v348_v18 = vrot.slane %v347_v14, 2  ;;  %v370_v25 = vadd.f32 %v369_v13, %v368_v0  ;;  %v421_v36 = vand.u32 2147483648, %v1134_v2  ;;  %vm415_vm3 = vweird.f32 %v1134_v2 }
  0xd8   : > { %v357_v19 = vrot.slane %v356_v15, 1  ;;  %v335_v20 = vadd.f32 %v334_v16, %v333_v12  ;;  %v359_v21 = vsel %vm243_vm1, %v1138_v17, 0.0  ;;  %v389_v40 = vand.u32 2147483647, %v1132_v63 }
  0xd9   : > { %v1142_v24 = vpop.eup %814  ;;  %v349_v27 = vadd.f32 %v348_v18, %v347_v14  ;;  %v360_v30 = vrot.slane %v359_v21, 4  ;;  %v371_v41 = vrot.slane %v370_v25, 1  ;;  %vm1161_vm4 = vcmp.eq.f32.partialorder %v419_v23, 8.507059e+37 }
  0xda   : > { %v1144_v31 = vadd.f32 %v357_v19, %v356_v15  ;;  %v336_v33 = vrot.slane %v335_v20, 1  ;;  %v373_v22 = vsel %vm243_vm1, %v1142_v24, 0.0  ;;  %v422_v55 = vor.u32 1.1754944e-38, %v421_v36 }
  0xdb   : > { %v817_v28 = vpop.eup %816  ;;  %v350_v29 = vrot.slane %v349_v27, 1  ;;  %v361_v34 = vadd.f32 %v360_v30, %v359_v21  ;;  %v374_v35 = vrot.slane %v373_v22, 4  ;;  %v391_v58 = vand.u32 2147483648, %v1132_v63 }
  0xdc   : > { %v819_v37 = vpop.eup %818  ;;  %820 = vrcp.f32 %v1144_v31  ;;  %v1152_v38 = vadd.f32 %v336_v33, %v335_v20  ;;  %v381_v39 = vmul.f32 %v817_v28, %v1132_v63  ;;  %vm386_vm5 = vweird.f32 %v817_v28 }
  0xdd   : > { %v1157_v42 = vadd.f32 %v350_v29, %v349_v27  ;;  %v362_v44 = vrot.slane %v361_v34, 2  ;;  %v375_v45 = vadd.f32 %v374_v35, %v373_v22  ;;  %v411_v47 = vmul.f32 %v819_v37, %v1134_v2  ;;  %vm387_vm9 = vmor %vm385_vm2, %vm386_vm5 }
  0xde   : > { %822 = vrcp.f32 %v1152_v38  ;;  %v382_v49 = vsub.f32 1.0, %v381_v39  ;;  %v1167_v53 = vadd.f32 %v371_v41, %v370_v25  ;;  %vm416_vm6 = vweird.f32 %v819_v37 }
  0xdf   : > { %824 = vrcp.f32 %v1157_v42  ;;  %v363_v51 = vadd.f32 %v362_v44, %v361_v34  ;;  %v376_v54 = vrot.slane %v375_v45, 2  ;;  %v412_v52 = vsub.f32 1.0, %v411_v47  ;;  %vm417_vm10 = vmor %vm415_vm3, %vm416_vm6 }
  0xe0   : > { %v383_v57 = vmul.f32 %v817_v28, %v382_v49  ;;  %vm1169_vm7 = vcmp.eq.f32.partialorder %v389_v40, 8.507059e+37  ;;  %vm445_vm8 = vweird.f32 %v1144_v31  ;;  %v392_v13 = vor.u32 1.1754944e-38, %v391_v58 }
  0xe1   : > { %v364_v59 = vrot.slane %v363_v51, 1  ;;  %v377_v60 = vadd.f32 %v376_v54, %v375_v45  ;;  %v413_v62 = vmul.f32 %v819_v37, %v412_v52  ;;  %v449_v19 = vand.u32 2147483647, %v1144_v31 }
  0xe2   : > { %v821_v61 = vpop.eup %820  ;;  %v384_v0 = vadd.f32 %v817_v28, %v383_v57  ;;  %v451_v20 = vand.u32 2147483648, %v1144_v31  ;;  %v434_v29 = vand.u32 2147483647, %v1157_v42  ;;  %vm430_vm13 = vweird.f32 %v1157_v42 }
  0xe3   : > { %v1174_v3 = vadd.f32 %v364_v59, %v363_v51  ;;  %v378_v12 = vrot.slane %v377_v60, 1  ;;  %v441_v14 = vmul.f32 %v821_v61, %v1144_v31  ;;  %v414_v16 = vadd.f32 %v819_v37, %v413_v62 }
  0xe4   : > { %v1179_v15 = vpop.eup %822  ;;  %v388_v18 = vsel %vm387_vm9, %v817_v28, %v384_v0  ;;  %vm446_vm11 = vweird.f32 %v821_v61  ;;  %vm450_vm12 = vcmp.eq.f32.partialorder %v449_v19, 8.507059e+37  ;;  %v436_v36 = vand.u32 2147483648, %v1157_v42 }
  0xe5   : > { %v825_v21 = vpop.eup %824  ;;  %826 = vrcp.f32 %v1174_v3  ;;  %v1184_v25 = vadd.f32 %v378_v12, %v377_v60  ;;  %v393_v63 = vsel %vm1169_vm7, %v392_v13, %v388_v18  ;;  %v442_v27 = vsub.f32 1.0, %v441_v14  ;;  %vm447_vm14 = vmor %vm445_vm8, %vm446_vm11 }
  0xe6   : > { %v418_v30 = vsel %vm417_vm10, %v819_v37, %v414_v16  ;;  %v394_v33 = vmul.f32 %v1107_v26, %v393_v63  ;;  %v426_v22 = vmul.f32 %v825_v21, %v1157_v42  ;;  %v396_v26 = vmul.f32 %v1179_v15, %v1152_v38 }
  0xe7   : > { %828 = vrcp.f32 %v1184_v25  ;;  %v423_v23 = vsel %vm1161_vm4, %v422_v55, %v418_v30  ;;  %v443_v28 = vmul.f32 %v821_v61, %v442_v27  ;;  %v452_v37 = vor.u32 1.1754944e-38, %v451_v20 }
  0xe8   : > { %830 = vrcp.f32 %v1167_v53  ;;  %v424_v2 = vmul.f32 %v1109_v32, %v423_v23  ;;  %502 = vperm.xlu0 %797, %v394_v33   ;;  %v427_v34 = vsub.f32 1.0, %v426_v22  ;;  %vm431_vm15 = vweird.f32 %v825_v21 }
  0xe9   : > { %v444_v35 = vadd.f32 %v821_v61, %v443_v28  ;;  %v397_v32 = vsub.f32 1.0, %v396_v26  ;;  %vm1206_vm1 = vcmp.eq.f32.partialorder %v434_v29, 8.507059e+37  ;;  %vm401_vm2 = vweird.f32 %v1179_v15  ;;  %vm432_vm3 = vmor %vm430_vm13, %vm431_vm15 }
  0xea   : > { %512 = vperm.xlu1 %798, %v424_v2   ;;  %v428_v39 = vmul.f32 %v825_v21, %v427_v34  ;;  %v406_v45 = vand.u32 2147483648, %v1152_v38  ;;  %v404_v31 = vand.u32 2147483647, %v1152_v38  ;;  %v437_v55 = vor.u32 1.1754944e-38, %v436_v36 }
  0xeb   : > { %v827_v40 = vpop.eup %826  ;;  %v448_v41 = vsel %vm447_vm14, %v821_v61, %v444_v35  ;;  %v398_v49 = vmul.f32 %v1179_v15, %v397_v32  ;;  %vm400_vm4 = vweird.f32 %v1152_v38  ;;  %vm460_vm5 = vweird.f32 %v1174_v3 }
  0xec   : > { %v453_v47 = vsel %vm450_vm12, %v452_v37, %v448_v41  ;;  %v429_v48 = vadd.f32 %v825_v21, %v428_v39  ;;  %v456_v52 = vmul.f32 %v827_v40, %v1174_v3  ;;  %v464_v60 = vand.u32 2147483647, %v1174_v3  ;;  %vm402_vm6 = vmor %vm400_vm4, %vm401_vm2 }
  0xed   : > { %v829_v51 = vpop.eup %828  ;;  %v454_v54 = vmul.f32 %v1115_v43, %v453_v47  ;;  %v399_v59 = vadd.f32 %v1179_v15, %v398_v49  ;;  %v407_v42 = vor.u32 1.1754944e-38, %v406_v45  ;;  %vm405_vm7 = vcmp.eq.f32.partialorder %v404_v31, 8.507059e+37 }
  0xee   : > { %v831_v57 = vpop.eup %830  ;;  %v433_v58 = vsel %vm432_vm3, %v825_v21, %v429_v48  ;;  %v457_v61 = vsub.f32 1.0, %v456_v52  ;;  %v486_v38 = vmul.f32 %v829_v51, %v1184_v25  ;;  %v466_v1 = vand.u32 2147483648, %v1174_v3 }
  0xef   : > { %522 = vperm.xlu2 %799, %v454_v54   ;;  %v438_v43 = vsel %vm1206_vm1, %v437_v55, %v433_v58  ;;  %v403_v0 = vsel %vm402_vm6, %v1179_v15, %v399_v59  ;;  %vm461_vm8 = vweird.f32 %v827_v40  ;;  %v496_v18 = vand.u32 2147483648, %v1184_v25 }
  0xf0   : > { %v439_v62 = vmul.f32 %v1126_v56, %v438_v43  ;;  %v408_v12 = vsel %vm405_vm7, %v407_v42, %v403_v0  ;;  %v458_v13 = vmul.f32 %v827_v40, %v457_v61  ;;  %v487_v14 = vsub.f32 1.0, %v486_v38  ;;  %vm462_vm10 = vmor %vm460_vm5, %vm461_vm8 }
  0xf1   : > { %v409_v16 = vmul.f32 %v1122_v50, %v408_v12  ;;  %v471_v19 = vmul.f32 %v831_v57, %v1167_v53  ;;  %vm491_vm9 = vweird.f32 %v829_v51  ;;  %v494_v56 = vand.u32 2147483647, %v1184_v25 }
  0xf2   : > { %517 = vperm.xlu1 %798, %v439_v62   ;;  %v459_v20 = vadd.f32 %v827_v40, %v458_v13  ;;  %v488_v21 = vmul.f32 %v829_v51, %v487_v14  ;;  %vm465_vm11 = vcmp.eq.f32.partialorder %v464_v60, 8.507059e+37  ;;  %v467_v15 = vor.u32 1.1754944e-38, %v466_v1 }
  0xf3   : > { %507 = vperm.xlu0 %797, %v409_v16   ;;  %vm490_vm12 = vweird.f32 %v1184_v25  ;;  %v472_v63 = vsub.f32 1.0, %v471_v19  ;;  %vm476_vm13 = vweird.f32 %v831_v57  ;;  %v481_v30 = vand.u32 2147483648, %v1167_v53 }
  0xf4   : > { %v463_v27 = vsel %vm462_vm10, %v827_v40, %v459_v20  ;;  %v489_v50 = vadd.f32 %v829_v51, %v488_v21  ;;  %vm492_vm14 = vmor %vm490_vm12, %vm491_vm9  ;;  %v497_v22 = vor.u32 1.1754944e-38, %v496_v18  ;;  %v479_v28 = vand.u32 2147483647, %v1167_v53 }
  0xf5   : > { %v468_v33 = vsel %vm465_vm11, %v467_v15, %v463_v27  ;;  %v473_v23 = vmul.f32 %v831_v57, %v472_v63  ;;  %vm495_vm15 = vcmp.eq.f32.partialorder %v494_v56, 8.507059e+37  ;;  %vm475_vm1 = vweird.f32 %v1167_v53 }
  0xf6   : > { %v469_v29 = vmul.f32 %v1138_v17, %v468_v33  ;;  %v493_v3 = vsel %vm492_vm14, %v829_v51, %v489_v50  ;;  %vm477_vm2 = vmor %vm475_vm1, %vm476_vm13  ;;  %v482_v26 = vor.u32 1.1754944e-38, %v481_v30  ;;  %vm480_vm3 = vcmp.eq.f32.partialorder %v479_v28, 8.507059e+37 }
  0xf7   : > { %v498_v2 = vsel %vm495_vm15, %v497_v22, %v493_v3  ;;  %v474_v34 = vadd.f32 %v831_v57, %v473_v23  ;;  %vm612_vm4 = vcmask 1041409   ;;  %vm614_vm5 = vcmask 1042434  }
  0xf8   : > { %527 = vperm.xlu2 %799, %v469_v29   ;;  %v499_v25 = vmul.f32 %v1142_v24, %v498_v2  ;;  %vm616_vm6 = vcmask 1043459   ;;  %vm618_vm7 = vcmask 1044484   ;;  %vm620_vm8 = vcmask 1045509  }
  0xf9   : > { %v478_v35 = vsel %vm477_vm2, %v831_v57, %v474_v34  ;;  %vm622_vm9 = vcmask 1046534   ;;  %vm624_vm10 = vcmask 1047559  }
  0xfa   : > { %537 = vperm.xlu1 %798, %v499_v25   ;;  %v483_v36 = vsel %vm480_vm3, %v482_v26, %v478_v35 }
  0xfb   : > { %v484_v37 = vmul.f32 %v1118_v46, %v483_v36 }
  0xfd   : > { %532 = vperm.xlu0 %797, %v484_v37  }
 0x149   : > { %v523_v17 = vpop.permute.xlu2 %522 }
 0x14a   : > { %v544_v24 = vmul.f32 %v523_v17, %v1063_v6 }
 0x14c   : > { %v576_v46 = vsel %vm177_vm0, %v544_v24, 0.0 }
 0x14d   : > { %v577_v55 = vrot.slane %v576_v46, 4 }
 0x14f   : > { %v578_v42 = vadd.f32 %v577_v55, %v576_v46 }
 0x151   : > { %v579_v14 = vrot.slane %v578_v42, 2 }
 0x152   : > { %v528_v44 = vpop.permute.xlu2 %527 }
 0x153   : > { %v545_v49 = vmul.f32 %v528_v44, %v1083_v10  ;;  %v580_v30 = vadd.f32 %v579_v14, %v578_v42 }
 0x155   : > { %v581_v26 = vrot.slane %v580_v30, 1 }
 0x15a   : > { %v503_v39 = vpop.permute.xlu0 %502 }
 0x15b   : > { %v540_v32 = vmul.f32 %v503_v39, %v1057_v4 }
 0x15c   : > { %v513_v40 = vpop.permute.xlu1 %512 }
 0x15d   : > { %v542_v53 = vmul.f32 %v513_v40, %v1060_v5  ;;  %v548_v41 = vsel %vm177_vm0, %v540_v32, 0.0  ;;  %v583_v5 = vsel %vm177_vm0, %v545_v49, 0.0 }
 0x15e   : > { %v549_v47 = vrot.slane %v548_v41, 4  ;;  %v584_v60 = vrot.slane %v583_v5, 4 }
 0x15f   : > { %v562_v45 = vsel %vm177_vm0, %v542_v53, 0.0 }
 0x160   : > { %v563_v48 = vrot.slane %v562_v45, 4  ;;  %v550_v31 = vadd.f32 %v549_v47, %v548_v41  ;;  %v585_v1 = vadd.f32 %v584_v60, %v583_v5  ;;  %v582_v41 = vadd.f32 %v581_v26, %v580_v30 }
 0x162   : > { %v564_v54 = vadd.f32 %v563_v48, %v562_v45  ;;  %v551_v58 = vrot.slane %v550_v31, 2  ;;  %v586_v15 = vrot.slane %v585_v1, 2 }
 0x164   : > { %v518_v51 = vpop.permute.xlu1 %517  ;;  %v565_v43 = vrot.slane %v564_v54, 2  ;;  %v552_v62 = vadd.f32 %v551_v58, %v550_v31  ;;  %v587_v2 = vadd.f32 %v586_v15, %v585_v1 }
 0x165   : > { %v543_v4 = vmul.f32 %v518_v51, %v1080_v9  ;;  %v508_v52 = vpop.permute.xlu0 %507 }
 0x166   : > { %v541_v57 = vmul.f32 %v508_v52, %v1077_v8  ;;  %v566_v12 = vadd.f32 %v565_v43, %v564_v54  ;;  %v553_v19 = vrot.slane %v552_v62, 1  ;;  %v588_v32 = vrot.slane %v587_v2, 1 }
 0x167   : > { %v569_v6 = vsel %vm177_vm0, %v543_v4, 0.0 }
 0x168   : > { %v570_v59 = vrot.slane %v569_v6, 4  ;;  %v555_v10 = vsel %vm177_vm0, %v541_v57, 0.0  ;;  %v567_v63 = vrot.slane %v566_v12, 1  ;;  %v589_v47 = vadd.f32 %v588_v32, %v587_v2 }
 0x169   : > { %v556_v38 = vrot.slane %v555_v10, 4 }
 0x16a   : > { %v571_v61 = vadd.f32 %v570_v59, %v569_v6  ;;  %v568_v34 = vadd.f32 %v567_v63, %v566_v12 }
 0x16b   : > { %v557_v9 = vadd.f32 %v556_v38, %v555_v10 }
 0x16c   : > { %v572_v0 = vrot.slane %v571_v61, 2  ;;  %v538_v13 = vpop.permute.xlu1 %537 }
 0x16d   : > { %v558_v16 = vrot.slane %v557_v9, 2  ;;  %v547_v18 = vmul.f32 %v538_v13, %v1086_v11  ;;  %v554_v11 = vadd.f32 %v553_v19, %v552_v62 }
 0x16e   : > { %v573_v8 = vadd.f32 %v572_v0, %v571_v61 }
 0x16f   : > { %v559_v20 = vadd.f32 %v558_v16, %v557_v9  ;;  %v597_v21 = vsel %vm177_vm0, %v547_v18, 0.0  ;;  %v533_v56 = vpop.permute.xlu0 %532 }
 0x170   : > { %v598_v27 = vrot.slane %v597_v21, 4  ;;  %v546_v50 = vmul.f32 %v533_v56, %v1066_v7  ;;  %v574_v22 = vrot.slane %v573_v8, 1 }
 0x171   : > { %v560_v33 = vrot.slane %v559_v20, 1 }
 0x172   : > { %v599_v23 = vadd.f32 %v598_v27, %v597_v21  ;;  %v590_v28 = vsel %vm177_vm0, %v546_v50, 0.0  ;;  %v575_v36 = vadd.f32 %v574_v22, %v573_v8 }
 0x173   : > { %v561_v29 = vadd.f32 %v560_v33, %v559_v20  ;;  %v591_v3 = vrot.slane %v590_v28, 4 }
 0x174   : > { %v600_v25 = vrot.slane %v599_v23, 2 }
 0x175   : > { %v613_v35 = vsel %vm612_vm4, %v561_v29, %v554_v11  ;;  %v592_v7 = vadd.f32 %v591_v3, %v590_v28 }
 0x176   : > { %v615_v37 = vsel %vm614_vm5, %v568_v34, %v613_v35  ;;  %v601_v17 = vadd.f32 %v600_v25, %v599_v23 }
 0x177   : > { %v593_v39 = vrot.slane %v592_v7, 2  ;;  %v617_v40 = vsel %vm616_vm6, %v575_v36, %v615_v37 }
 0x178   : > { %v602_v53 = vrot.slane %v601_v17, 1  ;;  %v619_v45 = vsel %vm618_vm7, %v582_v41, %v617_v40 }
 0x179   : > { %v594_v24 = vadd.f32 %v593_v39, %v592_v7  ;;  %v621_v46 = vsel %vm620_vm8, %v589_v47, %v619_v45 }
 0x17a   : > { %v603_v48 = vadd.f32 %v602_v53, %v601_v17 }
 0x17b   : > { %v595_v44 = vrot.slane %v594_v24, 1 }
 0x17d   : > { %v596_v49 = vadd.f32 %v595_v44, %v594_v24 }
 0x17f   : > { %v623_v31 = vsel %vm622_vm9, %v596_v49, %v621_v46 }
 0x180   : > { %v625_v51 = vsel %vm624_vm10, %v603_v48, %v623_v31 }
 0x181   : > { %627 = vst.msk [vmem:[%s163_s23] sm:$0xff] %vm177_vm0, %v625_v51 }
 0x182   : > { %889 = shalt.err (!%p886_p4)
}
 0x183   : > { %750 = dma.vmem_to_hbm [thread:$0]  (%p998_p11), %s642_s13, 128, %s644_s24, %s629_s26  }
 0x184 PF: > { %s655_s25 = sand.u32 1, %s916_s9   ;;  %p1309_p7 = scmp.ge.s32.totalorder %s928_s12, 2 }
 0x185   : > { %s656_s6 = scalar_lea.sflag [#allocation4], %s655_s25 }
 0x186   : > { %p757_p5 = pnand %p1309_p7, %p1002_p12 }
 0x188   : > { %p758_p8 = pneg %p757_p5 }
 0x18a   : > { %911 = dma.done.wait (%p758_p8), %s656_s6, 128  }
 0x18b   : > { %913 = vsyncadd (%p758_p8), %s656_s6, 4294967168  ;;  %p15_p10 = scmp.ge.s32.totalorder %s973_s15, 4   ;;  %s1310_s9 = smov %s920_s10 }
 0x18c   : > { %s1311_s10 = smov %s924_s11  ;;  %s1312_s11 = smov %s985_s18 }
 0x18d   : > { %s1313_s12 = smov %s973_s15  ;;  %17 = sbr.rel (!%p15_p10) target bundleno = 5 (0x5), region = 73 }
 0x192   :  { %662 = vsyncpa [#allocation3], 1 }
 0x193   :  { %664 = vsyncpa [#allocation3 + $0x1], 1 }
 0x194   :  { %665 = vsyncpa [#allocation4], 1 }
 0x195   :  { %667 = vsyncpa [#allocation4 + $0x1], 1 }

</bundles_post_ra>
